<compile_context>
chip_gen: v6e
topology: v6e:2x2x1
jax: 0.10.0
libtpu: 0.0.40
codegen_flags: <defaults>
</compile_context>

<pallas_src>
import jax
import jax.numpy as jnp
import numpy as np
from jax.experimental import pallas as pl
from jax.experimental.pallas import tpu as pltpu


def _round_up(x, m):
    return ((x + m - 1) // m) * m


def _round_down(x, m):
    return (x // m) * m


def _vmem_limit_bytes():
    """Generation-aware VMEM limit (v5e/v6e: 128 MiB physical, v7x: 64 MiB per TC)."""
    try:
        cap = int(pltpu.get_tpu_info().vmem_capacity_bytes)
    except Exception:
        cap = 64 * 1024 * 1024  # conservative fallback (v7x per-TC physical VMEM)
    # Leave ~25% headroom for Mosaic internal scratch; never exceed 96 MiB.
    return min((cap * 3) // 4, 96 * 1024 * 1024)


def _permutation_matrix(muls, dims, dtype):
    """One-hot matrix P with out[:, dst] = x[:, src], i.e. P[src, dst] = 1."""
    D = sum(dims)
    F = sum(m * d for m, d in zip(muls, dims))
    P = np.zeros((F, F), dtype=np.float32)
    ix = 0
    doff = 0
    for m_count, d in zip(muls, dims):
        for m in range(m_count):
            for j in range(d):
                src = ix + m * d + j
                dst = m * D + doff + j
                P[src, dst] = 1.0
        ix += m_count * d
        doff += d
    return jnp.asarray(P, dtype=dtype)


def _make_copy_kernel(muls, dims):
    """Default path: bulk lane permutation in registers, one dense store per tile.

    Bitwise-exact pass-through (NaN/Inf safe): only lane slicing + concatenation,
    no arithmetic.  Store is a single dense (TB, F) write (lane-dense), not
    mul*num_fields masked sub-128-lane stores.
    """
    mul = muls[0]
    field_offs = np.cumsum([0] + [m * d for m, d in zip(muls, dims)])

    def kernel(x_ref, o_ref):
        x = x_ref[...]                       # (TB, F) loaded once
        chunks = []
        for mi in range(mul):                # output column order: [mi][field][j]
            for f, d in enumerate(dims):
                c0 = int(field_offs[f]) + mi * d
                chunks.append(x[:, c0:c0 + d])
        o_ref[...] = jnp.concatenate(chunks, axis=-1)   # single lane-dense store

    return kernel


def _make_mxu_kernel(precision):
    """Opt-in path: fold the column permutation into one MXU matmul per tile."""

    def kernel(x_ref, p_ref, o_ref):
        o_ref[...] = jax.lax.dot_general(
            x_ref[...], p_ref[...],
            dimension_numbers=(((1,), (0,)), ((), ())),
            precision=precision,
            preferred_element_type=jnp.float32,
        ).astype(o_ref.dtype)

    return kernel


def reshape_irreps(x, muls, dims, *, block_batch=None, use_mxu=None,
                   target_tile_bytes=4 * 1024 * 1024):
    """JAX/Pallas equivalent of reshape_irreps.forward.

    x: (batch, sum_i mul_i*dim_i)  ->  (batch, mul, sum_i dim_i)

    block_batch : optional explicit batch tile (rows); default is byte-based auto sizing.
    use_mxu     : None = auto (copy path unless bf16/f16 with 256 <= F <= 1024),
                  True/False to force.  The copy path is exact and NaN/Inf safe.
    """
    muls = list(muls)
    dims = list(dims)
    assert len(muls) == len(dims) >= 1
    assert len(set(muls)) == 1, "concat along dim=-1 requires equal multiplicities"
    mul = muls[0]
    D = sum(dims)
    B, F = x.shape
    assert F == sum(m * d for m, d in zip(muls, dims)) == mul * D

    isz = jnp.dtype(x.dtype).itemsize
    pack = max(8, 32 // isz)           # sublane pack: 8 (f32), 16 (bf16), 32 (int8/fp8)
    vmem_limit = _vmem_limit_bytes()

    # ---- MXU-path gating (review: small F wastes MXU lanes; f32-HIGHEST / huge F are
    # compute-bound; wide P crowds VMEM) -------------------------------------------------
    if use_mxu is None:
        use_mxu = (
            F >= 256
            and F <= 1024
            and x.dtype != jnp.dtype(jnp.float32)
            and F * F * isz <= vmem_limit // 4
        )
    if use_mxu and F * F * isz > vmem_limit // 2:
        # Resident permutation matrix alone would crowd VMEM on wide irreps -> copy path.
        use_mxu = False

    p_bytes = F * F * isz if use_mxu else 0    # P is VMEM-resident & single-buffered

    # ---- byte-based batch-tile sizing ---------------------------------------------------
    if block_batch is None:
        TB = max(pack, target_tile_bytes // (F * isz))      # ~4 MiB input tile
        TB = min(TB, max(pack, pl.cdiv(B, 4)))              # keep >= 4 tiles for 2-TC split
    else:
        TB = int(block_batch)
    usable = vmem_limit - p_bytes - (2 << 20)               # in/out are double-buffered
    tb_vmem = max(pack, usable // (4 * F * isz))
    TB = min(TB, tb_vmem, _round_up(B, pack))
    TB = max(pack, _round_down(TB, pack))

    grid = (pl.cdiv(B, TB),)            # ragged tail tile is masked by Pallas

    # Last dim stays full (F need not be a multiple of 128); batch tile is a pack multiple.
    x_spec = pl.BlockSpec((TB, F), lambda i: (i, 0))
    o_spec = pl.BlockSpec((TB, F), lambda i: (i, 0))

    compiler_params = pltpu.CompilerParams(
        dimension_semantics=("parallel",),      # lets v7x shard batch tiles over its 2 TCs
        vmem_limit_bytes=int(vmem_limit),       # coherent with the tile-sizing budget above
    )

    if use_mxu:
        precision = (jax.lax.Precision.HIGHEST
                     if x.dtype == jnp.dtype(jnp.float32)
                     else jax.lax.Precision.DEFAULT)
        kernel = _make_mxu_kernel(precision)
        P = _permutation_matrix(muls, dims, x.dtype)
        in_specs = [
            x_spec,
            # Untiled, VMEM-resident operand: copied in once and single-buffered
            # (vs. double-buffered if it went through a blocked BlockSpec).
            pl.BlockSpec(memory_space=pltpu.MemorySpace.VMEM),
        ]
        operands = (x, P)
        cost = pl.CostEstimate(flops=2 * B * F * F, transcendentals=0,
                               bytes_accessed=(2 * B * F + F * F) * isz)
    else:
        kernel = _make_copy_kernel(muls, dims)
        in_specs = [x_spec]
        operands = (x,)
        cost = pl.CostEstimate(flops=0, transcendentals=0,
                               bytes_accessed=2 * B * F * isz)

    out_flat = pl.pallas_call(
        kernel,
        out_shape=jax.ShapeDtypeStruct((B, F), x.dtype),
        grid=grid,
        in_specs=in_specs,
        out_specs=o_spec,
        compiler_params=compiler_params,
        cost_estimate=cost,
    )(*operands)

    # Pure metadata reshape: (B, mul*D) row-major == (B, mul, D).
    return out_flat.reshape(B, mul, D)


def reshape_irreps_ref(x, muls, dims):
    """Pure-JAX reference mirroring the PyTorch forward exactly."""
    B = x.shape[0]
    ix = 0
    out = []
    for mul, d in zip(muls, dims):
        field = x[:, ix:ix + mul * d]
        ix += mul * d
        out.append(field.reshape(B, mul, d))
    return jnp.concatenate(out, axis=-1)


if __name__ == "__main__":
    # Irreps "4x0e + 4x1o + 4x2e"  ->  muls = [4, 4, 4], dims = [1, 3, 5]
    muls = [4, 4, 4]
    dims = [1, 3, 5]
    feat = sum(m * d for m, d in zip(muls, dims))  # 36

    key = jax.random.PRNGKey(0)
    k1, k2 = jax.random.split(key)

    # 1) f32, auto tiling (TB=8, grid=(2,)), default copy path -> bitwise exact.
    b1 = 16
    x1 = jax.random.normal(k1, (b1, feat), dtype=jnp.float32)
    out1 = jax.block_until_ready(reshape_irreps(x1, muls, dims))
    ref1 = reshape_irreps_ref(x1, muls, dims)
    assert out1.shape == (b1, muls[0], sum(dims)), out1.shape
    np.testing.assert_array_equal(np.asarray(out1), np.asarray(ref1))

    # 2) f32, explicit small tile with ragged tail (B=20, TB=8 -> grid=(3,)).
    b2 = 20
    x2 = jax.random.normal(k2, (b2, feat), dtype=jnp.float32)
    out2 = jax.block_until_ready(reshape_irreps(x2, muls, dims, block_batch=8))
    ref2 = reshape_irreps_ref(x2, muls, dims)
    np.testing.assert_array_equal(np.asarray(out2), np.asarray(ref2))

    # 3) bf16 (sublane pack 16), default path -> bitwise exact.
    x3 = x1.astype(jnp.bfloat16)
    out3 = jax.block_until_ready(reshape_irreps(x3, muls, dims))
    ref3 = reshape_irreps_ref(x3, muls, dims)
    np.testing.assert_array_equal(np.asarray(out3), np.asarray(ref3))

    # 4) NaN / Inf pass-through (copy path never does arithmetic on the data).
    x4 = x2.at[0, 0].set(jnp.nan).at[1, 5].set(jnp.inf)
    out4 = jax.block_until_ready(reshape_irreps(x4, muls, dims, block_batch=8))
    ref4 = reshape_irreps_ref(x4, muls, dims)
    assert np.array_equal(np.asarray(out4), np.asarray(ref4), equal_nan=True)

    print("KERNEL_OK")
</pallas_src>

<mosaic_0001>
module attributes {stable_mosaic.version = 11 : i64} {
  func.func @kernel(%arg0: i32, %arg1: memref<8x36xf32, #tpu.memory_space<vmem>>, %arg2: memref<8x36xf32, #tpu.memory_space<vmem>>) attributes {dimension_semantics = [#tpu.dimension_semantics<parallel>], iteration_bounds = array<i64: 2>, scalar_prefetch = 0 : i64, scratch_operands = 0 : i64, tpu.core_type = #tpu.core_type<tc>, window_params = [{transform_indices = @transform_0, window_bounds = array<i64: 8, 36>}, {transform_indices = @transform_1, window_bounds = array<i64: 8, 36>}]} {
    %c0 = arith.constant 0 : index
    %c0_0 = arith.constant 0 : index
    %0 = vector.load %arg1[%c0, %c0_0] : memref<8x36xf32, #tpu.memory_space<vmem>>, vector<8x36xf32>
    %1 = vector.extract_strided_slice %0 {offsets = [0, 0], sizes = [8, 1], strides = [1, 1]} : vector<8x36xf32> to vector<8x1xf32>
    %2 = vector.extract_strided_slice %0 {offsets = [0, 4], sizes = [8, 3], strides = [1, 1]} : vector<8x36xf32> to vector<8x3xf32>
    %3 = vector.extract_strided_slice %0 {offsets = [0, 16], sizes = [8, 5], strides = [1, 1]} : vector<8x36xf32> to vector<8x5xf32>
    %4 = vector.extract_strided_slice %0 {offsets = [0, 1], sizes = [8, 1], strides = [1, 1]} : vector<8x36xf32> to vector<8x1xf32>
    %5 = vector.extract_strided_slice %0 {offsets = [0, 7], sizes = [8, 3], strides = [1, 1]} : vector<8x36xf32> to vector<8x3xf32>
    %6 = vector.extract_strided_slice %0 {offsets = [0, 21], sizes = [8, 5], strides = [1, 1]} : vector<8x36xf32> to vector<8x5xf32>
    %7 = vector.extract_strided_slice %0 {offsets = [0, 2], sizes = [8, 1], strides = [1, 1]} : vector<8x36xf32> to vector<8x1xf32>
    %8 = vector.extract_strided_slice %0 {offsets = [0, 10], sizes = [8, 3], strides = [1, 1]} : vector<8x36xf32> to vector<8x3xf32>
    %9 = vector.extract_strided_slice %0 {offsets = [0, 26], sizes = [8, 5], strides = [1, 1]} : vector<8x36xf32> to vector<8x5xf32>
    %10 = vector.extract_strided_slice %0 {offsets = [0, 3], sizes = [8, 1], strides = [1, 1]} : vector<8x36xf32> to vector<8x1xf32>
    %11 = vector.extract_strided_slice %0 {offsets = [0, 13], sizes = [8, 3], strides = [1, 1]} : vector<8x36xf32> to vector<8x3xf32>
    %12 = vector.extract_strided_slice %0 {offsets = [0, 31], sizes = [8, 5], strides = [1, 1]} : vector<8x36xf32> to vector<8x5xf32>
    %13 = tpu.concatenate %1, %2, %3, %4, %5, %6, %7, %8, %9, %10, %11, %12 in 1 : vector<8x1xf32>, vector<8x3xf32>, vector<8x5xf32>, vector<8x1xf32>, vector<8x3xf32>, vector<8x5xf32>, vector<8x1xf32>, vector<8x3xf32>, vector<8x5xf32>, vector<8x1xf32>, vector<8x3xf32>, vector<8x5xf32> -> vector<8x36xf32>
    %c0_1 = arith.constant 0 : index
    %c0_2 = arith.constant 0 : index
    %14 = vector.load %arg2[%c0_1, %c0_2] : memref<8x36xf32, #tpu.memory_space<vmem>>, vector<8x36xf32>
    tpu.vector_store %arg2[%c0_1, %c0_2], %13 {strides = array<i32>} : memref<8x36xf32, #tpu.memory_space<vmem>>, vector<8x36xf32>,
    return
  }
  func.func @transform_0(%arg0: i32) -> (i32, i32) {
    %c0_i32 = arith.constant 0 : i32
    %c0_i32_0 = arith.constant 0 : i32
    return %arg0, %c0_i32 : i32, i32
  }
  func.func @transform_1(%arg0: i32) -> (i32, i32) {
    %c0_i32 = arith.constant 0 : i32
    %c0_i32_0 = arith.constant 0 : i32
    return %arg0, %c0_i32 : i32, i32
  }
}

</mosaic_0001>

<bundles_post_ra>
// kernel: tpu_custom_call.1
= control target key start
LH: loop header
LB: loop body
LE: loop exit
PB: predicated region body
PF: predicated region fallthrough
CT: control target
= control target key end

     0   :  { %6 = vsyncpa [#allocation3], 0  ;;  %s607_s0 = inlined_call_operand.hbm [shape: f32[16,36], index: 0, kind: input, shape index: {}]   ;;  %s608_s1 = inlined_call_operand.hbm [shape: f32[16,36], index: 1, kind: output, shape index: {}]  }
   0x1   :  { %8 = vsyncpa [#allocation3 + $0x1], 0 }
   0x2   :  { %9 = vsyncpa [#allocation4], 0 }
   0x3   :  { %11 = vsyncpa [#allocation4 + $0x1], 0  ;;  %s456_s6 = smov 0   ;;  %s458_s7 = smov 0  }
   0x4   :  { %s460_s8 = smov 0   ;;  %s462_s9 = smov 0  }
   0x5 LB: > { %s477_s10 = sadd.s32 4294967295, %s432_s9   ;;  %s272_s11 = sadd.s32 4294967294, %s432_s9   ;;  %s432_s9 = sphi %s462_s9, %s625_s9   ;;  %s428_s8 = sphi %s460_s8, %s624_s8   ;;  %s424_s7 = sphi %s458_s7, %s623_s7   ;;  %s420_s6 = sphi %s456_s6, %s622_s6  }
   0x6   : > { %s481_s12 = sadd.s32 1, %s432_s9   ;;  %s24_s13 = sadd.s32 1, %s428_s8 }
   0x7   : > { %s21_s14 = ssub.s32 %s432_s9, %s481_s12  ;;  %p31_p0 = scmp.ne.s32.totalorder %s428_s8, %s424_s7 }
   0x8   : > { %p22_p1 = scmp.eq.s32.totalorder %s21_s14, 0  ;;  %p32_p2 = scmp.eq.s32.totalorder %s432_s9, 0 }
   0x9   : > { %p37_p3 = scmp.ne.s32.totalorder %s424_s7, %s420_s6  ;;  %p38_p4 = scmp.eq.s32.totalorder %s477_s10, 0 }
   0xa   : > { %s493_s15 = scalar_select %p22_p1, %s428_s8, %s24_s13  }
   0xb   : > { %p495_p5 = por %p32_p2, %p31_p0  ;;  %p499_p6 = por %p38_p4, %p37_p3 }
   0xc   : > { %p61_p7 = scmp.eq.s32.totalorder %s477_s10, 1  ;;  %p67_p8 = scmp.eq.s32.totalorder %s272_s11, 1 }
   0xd   : > { %s612_s17 = scalar_select %p499_p6, 1, 0 }
   0xe   : > { %p296_p10 = scmp.lt.s32.totalorder %s432_s9, 2  ;;  %p506_p11 = por %p61_p7, %p31_p0 }
   0xf   : > { %p510_p12 = por %p67_p8, %p37_p3  ;;  %s87_s20 = sand.u32 1, %s428_s8  }
  0x10   : > { %s613_s18 = scalar_select %p506_p11, 1, 0 }
  0x11   : > { %s614_s19 = scalar_select %p510_p12, 1, 0 }
  0x12   : > { %s276_s21 = sshll.u32 %s432_s9, 7  ;;  %s275_s22 = sshll.u32 %s87_s20, 3 }
  0x13   : > { %s519_s25 = scalar_lea.hbm %s607_s0, %s276_s21  ;;  %s91_s26 = scalar_lea.vmem [#allocation2], %s275_s22 }
  0x14   : > { %s98_s27 = sshll.u32 %s91_s26, 4  ;;  %p523_p13 = pnand %p296_p10, %p495_p5  ;;  %s527_s27 = int_to_ptr.vmem [resolvable:$true] %s98_s27 }
  0x15   : > { %s88_s29 = scalar_lea.sflag [#allocation3], %s87_s20  ;;  %s340_s30 = scalar_lea.hbm %s519_s25, 128 }
  0x16   : > { %p341_p2 = scmp.ne.s32.totalorder %s519_s25, %s340_s30  ;;  %p342_p3 = pneg %p523_p13 }
  0x17   : > { %s345_s4 = scalar_lea.hbm %s607_s0, 256  ;;  %p346_p5 = scmp.lt.s32.totalorder %s519_s25, %s607_s0 }
  0x18   : > { %p343_p4 = pnand %p342_p3, %p341_p2  ;;  %p347_p8 = scmp.lt.s32.totalorder %s345_s4, %s340_s30 }
  0x1a   : > { %p344_p7 = pneg %p343_p4  ;;  %p348_p10 = por %p347_p8, %p346_p5 }
  0x1c   : > { %p349_p9 = pnand %p348_p10, %p344_p7 }
  0x1e   : > { %352 = shalt.err (!%p349_p9)
}
  0x1f   : > { %s353_s13 = scalar_lea.vmem %s527_s27, 128  ;;  %s434_s14 = smov [#allocation2]  }
  0x20   : > { %p354_p0 = scmp.ne.s32.totalorder %s527_s27, %s353_s13  ;;  %s358_s16 = sshll.u32 %s434_s14, 4  ;;  %s359_s16 = int_to_ptr.vmem [resolvable:$false] %s358_s16 }
  0x21   : > { %s360_s20 = scalar_lea.vmem %s359_s16, 256  ;;  %p361_p4 = scmp.lt.s32.totalorder %s527_s27, %s359_s16 }
  0x22   : > { %p356_p1 = pnand %p354_p0, %p342_p3  ;;  %p362_p12 = scmp.lt.s32.totalorder %s360_s20, %s353_s13 }
  0x24   : > { %p357_p2 = pneg %p356_p1  ;;  %p363_p11 = por %p362_p12, %p361_p4 }
  0x26   : > { %p364_p6 = pnand %p363_p11, %p357_p2 }
  0x28   : > { %367 = shalt.err (!%p364_p6)
}
  0x29   : > { %291 = dma.hbm_to_vmem [thread:$0]  (!%p523_p13), %s519_s25, 128, %s527_s27, %s88_s29  }
  0x2a   : > { %p616_p9 = scmp.lt.s32.totalorder %s432_s9, 3  ;;  %p617_p7 = scmp.ge.s32.totalorder %s432_s9, 1 }
  0x2c   : > { %p104_p0 = pnand %p617_p7, %p616_p9 }
  0x2d   : > { %s554_s21 = sand.u32 (!%p104_p0), 1, %s424_s7   ;;  %p618_p6 = scmp.ne.s32.totalorder (!%p104_p0), %s612_s17, 0 }
  0x2e   : > { %107 = sbr.rel (%p104_p0) target bundleno = 200 (0xc8), region = 24  ;;  %s278_s22 = sshll.u32 (!%p104_p0), %s554_s21, 3 }
  0x2f   : > { %s110_s23 = scalar_lea.sflag (!%p104_p0), [#allocation3], %s554_s21  ;;  %s113_s24 = scalar_lea.vmem (!%p104_p0), [#allocation2], %s278_s22 }
  0x33   : > { %411 = dma.done.wait (%p618_p6), %s110_s23, 128  }
  0x34   : > { %413 = vsyncadd (%p618_p6), %s110_s23, 4294967168  ;;  %v132_v0 = vld [vmem:[%s113_s24] sm:$0xff]  ;;  %s435_s25 = smov 125   ;;  %s436_s26 = smov 8   ;;  %vm164_vm0 = vcmask 7168   ;;  %vm166_vm1 = vcmask 31744  }
  0x35   : > { %134 = vrot.lane.b32.xlu0 %v132_v0, %s435_s25  ;;  %140 = vrot.lane.b32.xlu1 %v132_v0, %s436_s26  ;;  %s437_s27 = smov 116   ;;  %s438_s28 = smov 3   ;;  %vm168_vm2 = vcmask 72704   ;;  %vm170_vm3 = vcmask 80896   ;;  %vm172_vm4 = vcmask 105472   ;;  %vm174_vm5 = vcmask 146432  }
  0x36   : > { %s439_s29 = smov 120   ;;  %s440_s30 = smov 16   ;;  %vm176_vm6 = vcmask 154624   ;;  %vm178_vm7 = vcmask 179200   ;;  %vm180_vm8 = vcmask 220160   ;;  %vm182_vm9 = vcmask 228352  }
  0x37   : > { %s441_s2 = smov 9   ;;  %s442_s3 = smov 124   ;;  %vm184_vm10 = vcmask 252928   ;;  %vm186_vm11 = vcmask 293888  }
  0x38   : > { %s443_s4 = smov 24   ;;  %s444_s17 = smov 15  }
  0x39   : > { %137 = vrot.lane.b32.xlu0 %v132_v0, %s437_s27  ;;  %143 = vrot.lane.b32.xlu1 %v132_v0, %s438_s28  ;;  %s281_s5 = sshll.u32 %s477_s10, 7  ;;  %s131_s11 = scalar_lea.vmem [#allocation5], %s278_s22 }
  0x3a   : > { %s202_s13 = sshll.u32 %s131_s11, 4  ;;  %s570_s20 = scalar_lea.hbm %s608_s1, %s281_s5  ;;  %s203_s13 = int_to_ptr.vmem [resolvable:$true] %s202_s13 }
  0x3b   : > { %s189_s10 = scalar_lea.sflag [#allocation4], %s554_s21  ;;  %s368_s23 = scalar_lea.vmem %s203_s13, 128 }
  0x3c   : > { %p369_p11 = scmp.ne.s32.totalorder %s203_s13, %s368_s23  ;;  %p619_p12 = scmp.ne.s32.totalorder %s613_s18, 0 }
  0x3d   : > { %146 = vrot.lane.b32.xlu0 %v132_v0, %s439_s29  ;;  %149 = vrot.lane.b32.xlu1 %v132_v0, %s440_s30  ;;  %s445_s22 = smov [#allocation5]  }
  0x3e   : > { %p370_p13 = pnand %p369_p11, %p619_p12  ;;  %s372_s24 = sshll.u32 %s445_s22, 4  ;;  %s373_s24 = int_to_ptr.vmem [resolvable:$false] %s372_s24 }
  0x3f   : > { %s374_s25 = scalar_lea.vmem %s373_s24, 256  ;;  %p375_p3 = scmp.lt.s32.totalorder %s203_s13, %s373_s24 }
  0x40   : > { %p371_p1 = pneg %p370_p13  ;;  %p376_p5 = scmp.lt.s32.totalorder %s374_s25, %s368_s23 }
  0x41   : > { %152 = vrot.lane.b32.xlu0 %v132_v0, %s441_s2  ;;  %155 = vrot.lane.b32.xlu1 %v132_v0, %s442_s3 }
  0x42   : > { %p377_p8 = por %p376_p5, %p375_p3 }
  0x44   : > { %p378_p10 = pnand %p377_p8, %p371_p1 }
  0x45   : > { %158 = vrot.lane.b32.xlu0 %v132_v0, %s443_s4  ;;  %161 = vrot.lane.b32.xlu1 %v132_v0, %s444_s17 }
  0xa7   : > { %v135_v1 = vpop.permute.xlu0 %134  ;;  %v141_v2 = vpop.permute.xlu1 %140 }
  0xa8   : > { %v165_v3 = vsel %vm164_vm0, %v132_v0, %v135_v1 }
  0xab   : > { %v138_v4 = vpop.permute.xlu0 %137  ;;  %v144_v5 = vpop.permute.xlu1 %143 }
  0xac   : > { %v167_v6 = vsel %vm166_vm1, %v165_v3, %v138_v4 }
  0xad   : > { %v169_v7 = vsel %vm168_vm2, %v167_v6, %v141_v2 }
  0xae   : > { %v171_v8 = vsel %vm170_vm3, %v169_v7, %v144_v5 }
  0xaf   : > { %v147_v9 = vpop.permute.xlu0 %146  ;;  %v150_v10 = vpop.permute.xlu1 %149 }
  0xb0   : > { %v173_v11 = vsel %vm172_vm4, %v171_v8, %v147_v9 }
  0xb1   : > { %v175_v12 = vsel %vm174_vm5, %v173_v11, %v150_v10 }
  0xb3   : > { %v153_v13 = vpop.permute.xlu0 %152  ;;  %v156_v14 = vpop.permute.xlu1 %155 }
  0xb4   : > { %v177_v15 = vsel %vm176_vm6, %v175_v12, %v153_v13 }
  0xb5   : > { %v179_v16 = vsel %vm178_vm7, %v177_v15, %v156_v14 }
  0xb7   : > { %v159_v17 = vpop.permute.xlu0 %158  ;;  %v162_v18 = vpop.permute.xlu1 %161 }
  0xb8   : > { %v181_v19 = vsel %vm180_vm8, %v179_v16, %v159_v17 }
  0xb9   : > { %v183_v20 = vsel %vm182_vm9, %v181_v19, %v162_v18 }
  0xba   : > { %v185_v21 = vsel %vm184_vm10, %v183_v20, %v132_v0 }
  0xbb   : > { %187 = vst.msk [vmem:[%s131_s11] sm:$0xff] %vm186_vm11, %v185_v21 }
  0xbc   : > { %381 = shalt.err (!%p378_p10)
}
  0xbd   : > { %s382_s26 = scalar_lea.hbm %s570_s20, 128  ;;  %s386_s28 = scalar_lea.hbm %s608_s1, 256 }
  0xbe   : > { %p383_p2 = scmp.ne.s32.totalorder %s570_s20, %s382_s26  ;;  %p387_p7 = scmp.lt.s32.totalorder %s570_s20, %s608_s1 }
  0xbf   : > { %p388_p0 = scmp.lt.s32.totalorder %s386_s28, %s382_s26 }
  0xc0   : > { %p384_p4 = pnand %p383_p2, %p619_p12 }
  0xc1   : > { %p389_p6 = por %p388_p0, %p387_p7 }
  0xc2   : > { %p385_p9 = pneg %p384_p4 }
  0xc4   : > { %p390_p11 = pnand %p389_p6, %p385_p9 }
  0xc6   : > { %393 = shalt.err (!%p390_p11)
}
  0xc7   : > { %286 = dma.vmem_to_hbm [thread:$0]  (%p619_p12), %s203_s13, 128, %s570_s20, %s189_s10  }
  0xc8 PF: > { %s214_s2 = sand.u32 1, %s420_s6   ;;  %p620_p13 = scmp.ne.s32.totalorder %s614_s19, 0 }
  0xc9   : > { %p621_p1 = scmp.ge.s32.totalorder %s432_s9, 2  ;;  %s215_s3 = scalar_lea.sflag [#allocation4], %s214_s2 }
  0xcb   : > { %p293_p3 = pnand %p621_p1, %p620_p13 }
  0xcd   : > { %p294_p5 = pneg %p293_p3 }
  0xcf   : > { %415 = dma.done.wait (%p294_p5), %s215_s3, 128  }
  0xd0   : > { %417 = vsyncadd (%p294_p5), %s215_s3, 4294967168  ;;  %p14_p8 = scmp.ge.s32.totalorder %s481_s12, 4   ;;  %s622_s6 = smov %s424_s7 }
  0xd1   : > { %s623_s7 = smov %s428_s8  ;;  %s624_s8 = smov %s493_s15 }
  0xd2   : > { %s625_s9 = smov %s481_s12  ;;  %16 = sbr.rel (!%p14_p8) target bundleno = 5 (0x5), region = 69 }
  0xd7   :  { %220 = vsyncpa [#allocation3], 1 }
  0xd8   :  { %222 = vsyncpa [#allocation3 + $0x1], 1 }
  0xd9   :  { %223 = vsyncpa [#allocation4], 1 }
  0xda   :  { %225 = vsyncpa [#allocation4 + $0x1], 1 }

</bundles_post_ra>
